<compile_context>
chip_gen: v5e
topology: v5e:2x2
jax: 0.10.0
libtpu: 0.0.40
codegen_flags: <defaults>
</compile_context>

<pallas_src>
import functools

import jax
import jax.numpy as jnp
from jax.experimental import pallas as pl
from jax.experimental.pallas import tpu as pltpu


# ----------------------------- chip-aware defaults ---------------------------

def _detect_vmem_bytes():
    try:
        return int(pltpu.get_tpu_info().vmem_capacity_bytes)
    except Exception:
        return None


_VMEM_CAP = _detect_vmem_bytes()
if _VMEM_CAP is None:
    _VMEM_LIMIT = None                       # fall back to compiler default scoped limit
    _BIG_VMEM = False
else:
    # leave headroom (never request the whole physical VMEM, esp. on v7x's 64 MiB)
    _VMEM_LIMIT = min((_VMEM_CAP * 3) // 4, 100 * 1024 * 1024)
    _BIG_VMEM = _VMEM_CAP >= 96 * 1024 * 1024

_TM = 512 if _BIG_VMEM else 256              # token-row tile for dense / MoE matmuls
_TH = 512 if _BIG_VMEM else 256              # MoE hidden-chunk tile
_T_ATT = 256                                 # attention S tile (v6e/v7x MXU is 256x256)


def _cparams(dims):
    kw = dict(dimension_semantics=dims)
    if _VMEM_LIMIT is not None:
        kw["vmem_limit_bytes"] = int(_VMEM_LIMIT)
    return pltpu.CompilerParams(**kw)


# ------------------------------- tiling helpers -------------------------------

def _round_up(x, m):
    return ((x + m - 1) // m) * m


def _pick_tile(dim, pref):
    """Largest clean tile <= pref that divides dim (lane/sublane aligned), else full dim."""
    if dim <= pref:
        return dim
    if dim % pref == 0:
        return pref
    for align in (128, 8):
        start = pref - (pref % align)
        for t in range(start, 0, -align):
            if t > 0 and dim % t == 0:
                return t
    return dim  # TODO(synk): pad pathological static dims instead of a giant block


def _pad_axis(x, axis, mult):
    pad = (-x.shape[axis]) % mult
    if pad == 0:
        return x
    widths = [(0, 0)] * x.ndim
    widths[axis] = (0, pad)
    return jnp.pad(x, widths)


def _row_tile_and_pad(x, pref):
    """Pick a row tile and zero-pad rows so the grid always tiles cleanly."""
    m = x.shape[0]
    tm = min(pref, _round_up(m, 8))
    return _pad_axis(x, 0, tm), tm, m


# ---------------------- tiled matmul (K-accumulating) -------------------------

def _matmul_kernel(x_ref, w_ref, o_ref):
    @pl.when(pl.program_id(2) == 0)
    def _():
        o_ref[...] = jnp.zeros_like(o_ref)

    o_ref[...] += jnp.dot(x_ref[...].astype(jnp.bfloat16),
                          w_ref[...].astype(jnp.bfloat16),
                          preferred_element_type=jnp.float32)


def matmul(x, w, *, tm=None, tn=256, tk=512):
    M0, K = x.shape
    _, N = w.shape
    tn = _pick_tile(N, tn)
    tk = _pick_tile(K, tk)
    xp, tm, M0 = _row_tile_and_pad(x, tm or _TM)
    M = xp.shape[0]
    out = pl.pallas_call(
        _matmul_kernel,
        grid=(M // tm, N // tn, K // tk),
        in_specs=[pl.BlockSpec((tm, tk), lambda i, j, k: (i, k)),
                  pl.BlockSpec((tk, tn), lambda i, j, k: (k, j))],
        out_specs=pl.BlockSpec((tm, tn), lambda i, j, k: (i, j)),
        out_shape=jax.ShapeDtypeStruct((M, N), jnp.float32),
        compiler_params=_cparams(("parallel", "parallel", "arbitrary")),
    )(xp, w)
    return out[:M0]


# ----------------------- fused RMSNorm + matmul --------------------------------
# Normalized bf16 tile cached in VMEM scratch at j==0 and reused across column blocks.

def _rmsnorm_matmul_kernel(x_ref, nw_ref, w_ref, o_ref, xn_sc, *, eps):
    @pl.when(pl.program_id(1) == 0)
    def _():
        x = x_ref[...].astype(jnp.float32)
        ms = jnp.mean(x * x, axis=-1, keepdims=True)
        xn_sc[...] = ((x * jax.lax.rsqrt(ms + eps)) * nw_ref[...]).astype(jnp.bfloat16)

    o_ref[...] = jnp.dot(xn_sc[...], w_ref[...].astype(jnp.bfloat16),
                         preferred_element_type=jnp.float32).astype(o_ref.dtype)


def rmsnorm_matmul(x, norm_w, w, eps, *, tm=None, tn=256, out_dtype=jnp.float32):
    M0, D = x.shape
    _, N = w.shape
    tn = _pick_tile(N, tn)
    xp, tm, M0 = _row_tile_and_pad(x, tm or _TM)
    M = xp.shape[0]
    out = pl.pallas_call(
        functools.partial(_rmsnorm_matmul_kernel, eps=eps),
        grid=(M // tm, N // tn),
        in_specs=[pl.BlockSpec((tm, D), lambda i, j: (i, 0)),
                  pl.BlockSpec((1, D), lambda i, j: (0, 0)),
                  pl.BlockSpec((D, tn), lambda i, j: (0, j))],
        out_specs=pl.BlockSpec((tm, tn), lambda i, j: (i, j)),
        out_shape=jax.ShapeDtypeStruct((M, N), out_dtype),
        scratch_shapes=[pltpu.VMEM((tm, D), jnp.bfloat16)],
        compiler_params=_cparams(("parallel", "arbitrary")),
    )(xp, norm_w.reshape(1, D), w)
    return out[:M0]


# ------------------- flash attention (online softmax, GQA) ---------------------
# Grid (B*Hkv, S/t, S/t): all `repeats` query heads of a KV group share one invocation,
# so each K/V block is streamed once per group.  KV blocks entirely above the causal
# diagonal are neither computed (pl.when) nor DMA'd (clamped index_map).

def _flash_attn_kernel(q_ref, k_ref, v_ref, o_ref, m_sc, l_sc, acc_sc,
                       *, scale, tq, tk, repeats):
    ki = pl.program_id(2)

    @pl.when(ki == 0)
    def _():
        m_sc[...] = jnp.full_like(m_sc, -jnp.inf)
        l_sc[...] = jnp.zeros_like(l_sc)
        acc_sc[...] = jnp.zeros_like(acc_sc)

    q_start = pl.program_id(1) * tq
    k_start = ki * tk

    @pl.when(k_start <= q_start + (tq - 1))
    def _():
        q = q_ref[0].reshape(repeats * tq, -1).astype(jnp.bfloat16)   # (r*tq, Dh)
        k = k_ref[0].astype(jnp.bfloat16)                             # (tk, Dh)
        s = jnp.dot(q, k.T, preferred_element_type=jnp.float32) * scale
        rows = (jax.lax.broadcasted_iota(jnp.int32, (repeats * tq, tk), 0) % tq) + q_start
        cols = jax.lax.broadcasted_iota(jnp.int32, (repeats * tq, tk), 1) + k_start
        s = jnp.where(rows >= cols, s, -jnp.inf)                      # in-kernel causal mask
        m_new = jnp.maximum(m_sc[...], jnp.max(s, axis=-1, keepdims=True))
        alpha = jnp.exp(m_sc[...] - m_new)
        p = jnp.exp(s - m_new)
        l_sc[...] = alpha * l_sc[...] + jnp.sum(p, axis=-1, keepdims=True)
        acc_sc[...] = alpha * acc_sc[...] + jnp.dot(
            p.astype(jnp.bfloat16), v_ref[0].astype(jnp.bfloat16),
            preferred_element_type=jnp.float32)
        m_sc[...] = m_new

    @pl.when(ki == pl.num_programs(2) - 1)
    def _():
        o = acc_sc[...] * pl.reciprocal(l_sc[...], approx=True)
        o_ref[0] = o.reshape(repeats, tq, -1).astype(o_ref.dtype)


def flash_attention(q, k, v, scale, *, tile=None):
    # q: (G=B*Hkv, repeats, S, Dh) bf16;  k, v: (G, S, Dh) bf16
    G, repeats, S0, Dh = q.shape
    t = min(tile or _T_ATT, _round_up(S0, 8))
    q = _pad_axis(q, 2, t)
    k = _pad_axis(k, 1, t)
    v = _pad_axis(v, 1, t)
    S = q.shape[2]

    def kv_index(g, qi, ki):
        # clamp to the last block touching the causal diagonal so masked KV tiles
        # reuse the previous block index and their DMA is elided
        last = ((qi + 1) * t - 1) // t
        return (g, jnp.minimum(ki, last), 0)

    kernel = functools.partial(_flash_attn_kernel, scale=scale, tq=t, tk=t,
                               repeats=repeats)
    out = pl.pallas_call(
        kernel,
        grid=(G, S // t, S // t),
        in_specs=[pl.BlockSpec((1, repeats, t, Dh), lambda g, qi, ki: (g, 0, qi, 0)),
                  pl.BlockSpec((1, t, Dh), kv_index),
                  pl.BlockSpec((1, t, Dh), kv_index)],
        out_specs=pl.BlockSpec((1, repeats, t, Dh), lambda g, qi, ki: (g, 0, qi, 0)),
        out_shape=jax.ShapeDtypeStruct((G, repeats, S, Dh), jnp.bfloat16),
        scratch_shapes=[pltpu.VMEM((repeats * t, 1), jnp.float32),
                        pltpu.VMEM((repeats * t, 1), jnp.float32),
                        pltpu.VMEM((repeats * t, Dh), jnp.float32)],
        compiler_params=_cparams(("parallel", "parallel", "arbitrary")),
    )(q, k, v)
    return out[:, :, :S0, :]


# ------------------------------- MoE kernel ------------------------------------
# grid = (token tiles [parallel], experts [arbitrary], hidden chunks [arbitrary]);
# output tile is resident across (e, c) and accumulates
#   sum_e gate[:, e] * sum_c  SwiGLU_c(rmsnorm(h)) @ w2_c .
# rmsnorm(h) is computed once per token tile into a bf16 VMEM scratch.

def _moe_kernel(x_ref, nw_ref, wd_ref, w1_ref, w3_ref, w2_ref, o_ref, xn_sc, *, eps):
    e = pl.program_id(1)
    c = pl.program_id(2)

    @pl.when(jnp.logical_and(e == 0, c == 0))
    def _():
        o_ref[...] = jnp.zeros_like(o_ref)
        x = x_ref[...].astype(jnp.float32)
        ms = jnp.mean(x * x, axis=-1, keepdims=True)
        xn_sc[...] = ((x * jax.lax.rsqrt(ms + eps)) * nw_ref[...]).astype(jnp.bfloat16)

    xn = xn_sc[...]
    h1 = jnp.dot(xn, w1_ref[0, 0], preferred_element_type=jnp.float32)   # (tm, th)
    h3 = jnp.dot(xn, w3_ref[0, 0], preferred_element_type=jnp.float32)   # (tm, th)
    act = (h1 * (1.0 / (1.0 + jnp.exp(-h1))) * h3).astype(jnp.bfloat16)  # silu(h1)*h3
    y = jnp.dot(act, w2_ref[0, 0], preferred_element_type=jnp.float32)   # (tm, D)
    o_ref[...] += wd_ref[0] * y                                          # gate (tm, 1)


def moe_ffn(h, norm_w, w_dense, w1c, w3c, w2c, eps, *, tm=None):
    T0, D = h.shape
    E, nC, _, th = w1c.shape
    hp, tm, T0 = _row_tile_and_pad(h, tm or _TM)
    M = hp.shape[0]
    wd = _pad_axis(w_dense, 0, tm).T.reshape(E, M, 1)
    kernel = functools.partial(_moe_kernel, eps=eps)
    out = pl.pallas_call(
        kernel,
        grid=(M // tm, E, nC),
        in_specs=[pl.BlockSpec((tm, D), lambda t, e, c: (t, 0)),
                  pl.BlockSpec((1, D), lambda t, e, c: (0, 0)),
                  pl.BlockSpec((1, tm, 1), lambda t, e, c: (e, t, 0)),
                  pl.BlockSpec((1, 1, D, th), lambda t, e, c: (e, c, 0, 0)),
                  pl.BlockSpec((1, 1, D, th), lambda t, e, c: (e, c, 0, 0)),
                  pl.BlockSpec((1, 1, th, D), lambda t, e, c: (e, c, 0, 0))],
        out_specs=pl.BlockSpec((tm, D), lambda t, e, c: (t, 0)),
        out_shape=jax.ShapeDtypeStruct((M, D), jnp.float32),
        scratch_shapes=[pltpu.VMEM((tm, D), jnp.bfloat16)],
        compiler_params=_cparams(("parallel", "arbitrary", "arbitrary")),
    )(hp, norm_w.reshape(1, D), wd, w1c, w3c, w2c)
    return out[:T0]


# ------------------------------- RoPE (glue) ------------------------------------

def apply_rotary_emb(x, cos, sin):
    # x: (B, S, H, Dh); cos/sin: (S, Dh//2); complex pairs are consecutive (2p, 2p+1)
    B, S, H, Dh = x.shape
    xp = x.astype(jnp.float32).reshape(B, S, H, Dh // 2, 2)
    xr, xi = xp[..., 0], xp[..., 1]
    c = cos[None, :, None, :]
    s = sin[None, :, None, :]
    out_r = xr * c - xi * s
    out_i = xr * s + xi * c
    return jnp.stack([out_r, out_i], axis=-1).reshape(B, S, H, Dh)


# -------------------------- TransformerBlock forward -----------------------------

def transformer_block_forward(params, x, cos, sin, cfg):
    B, S, D = x.shape
    T = B * S
    Hq, Hkv, Dh = cfg["n_heads"], cfg["n_kv_heads"], cfg["head_dim"]
    repeats = Hq // Hkv
    eps = cfg["norm_eps"]
    scale = Dh ** -0.5

    x2 = x.reshape(T, D)

    # ---- attention block: fused RMSNorm + QKV projection, bf16 activations ----
    qkv = rmsnorm_matmul(x2, params["attn_norm_w"], params["w_qkv"], eps,
                         out_dtype=jnp.bfloat16)
    qd, kvd = Hq * Dh, Hkv * Dh
    xq = qkv[:, :qd].reshape(B, S, Hq, Dh)
    xk = qkv[:, qd:qd + kvd].reshape(B, S, Hkv, Dh)
    xv = qkv[:, qd + kvd:].reshape(B, S, Hkv, Dh)

    xq = apply_rotary_emb(xq, cos, sin).astype(jnp.bfloat16)
    xk = apply_rotary_emb(xk, cos, sin).astype(jnp.bfloat16)
    xv = xv.astype(jnp.bfloat16)

    # TODO(synk): decode-path KV-cache scatter/gather not implemented (prefill path only).
    # TODO(synk): RoPE + head-major transpose still run as XLA glue; could be fused as a
    #             QKV-kernel epilogue (pltpu.roll on pre-interleaved cos/sin).
    q = xq.transpose(0, 2, 1, 3).reshape(B * Hkv, repeats, S, Dh)   # group query heads per KV head
    k = xk.transpose(0, 2, 1, 3).reshape(B * Hkv, S, Dh)
    v = xv.transpose(0, 2, 1, 3).reshape(B * Hkv, S, Dh)

    attn = flash_attention(q, k, v, scale)                           # (B*Hkv, repeats, S, Dh) bf16
    attn = attn.reshape(B, Hq, S, Dh).transpose(0, 2, 1, 3).reshape(T, Hq * Dh)
    attn_out = matmul(attn, params["wo_t"])                          # (T, D) f32

    h = x2 + attn_out

    # ---- MoE feed-forward block (ffn norm fused into gate matmul and expert kernel) ----
    gate_logits = rmsnorm_matmul(h, params["ffn_norm_w"], params["gate_t"], eps,
                                 out_dtype=jnp.float32)              # (T, E)
    topk_vals, topk_idx = jax.lax.top_k(gate_logits, cfg["num_experts_per_tok"])
    topk_w = jax.nn.softmax(topk_vals.astype(jnp.float32), axis=-1)
    w_dense = jnp.zeros((T, cfg["num_experts"]), jnp.float32)
    w_dense = w_dense.at[jnp.arange(T)[:, None], topk_idx].set(topk_w)

    # TODO(synk): dense all-expert compute; a routed/grouped (scalar-prefetch) MoE would
    # cut FLOPs and weight streaming by num_experts / num_experts_per_tok.
    moe_out = moe_ffn(h, params["ffn_norm_w"], w_dense,
                      params["w1c"], params["w3c"], params["w2c"], eps)  # (T, D)

    out = h + moe_out
    return out.reshape(B, S, D)


# ------------------------------- setup / main -------------------------------------

def init_params(key, cfg, *, th=None):
    D, Dh = cfg["dim"], cfg["head_dim"]
    Hq, Hkv = cfg["n_heads"], cfg["n_kv_heads"]
    Hd, E = cfg["hidden_dim"], cfg["num_experts"]
    th = _pick_tile(Hd, th or _TH)
    nC = Hd // th
    ks = jax.random.split(key, 8)
    s = 0.05
    # torch nn.Linear weight layout is (out, in); kernels use the transpose.
    wq = jax.random.normal(ks[0], (Hq * Dh, D), jnp.float32) * s
    wk = jax.random.normal(ks[1], (Hkv * Dh, D), jnp.float32) * s
    wv = jax.random.normal(ks[2], (Hkv * Dh, D), jnp.float32) * s
    wo = jax.random.normal(ks[3], (D, Hq * Dh), jnp.float32) * s
    gate = jax.random.normal(ks[4], (E, D), jnp.float32) * s
    w1 = jax.random.normal(ks[5], (E, Hd, D), jnp.float32) * s   # (out=hidden, in=dim)
    w2 = jax.random.normal(ks[6], (E, D, Hd), jnp.float32) * s   # (out=dim, in=hidden)
    w3 = jax.random.normal(ks[7], (E, Hd, D), jnp.float32) * s

    # hidden-chunked expert weights (kernel layouts, bf16 for the MXU)
    w1c = jnp.transpose(w1, (0, 2, 1)).reshape(E, D, nC, th).transpose(0, 2, 1, 3)
    w3c = jnp.transpose(w3, (0, 2, 1)).reshape(E, D, nC, th).transpose(0, 2, 1, 3)
    w2c = jnp.transpose(w2, (0, 2, 1)).reshape(E, nC, th, D)
    return {
        "attn_norm_w": jnp.ones((D,), jnp.float32),
        "ffn_norm_w": jnp.ones((D,), jnp.float32),
        # fused QKV projection weight: (D, (Hq + 2*Hkv) * Dh), bf16 for MXU
        "w_qkv": jnp.concatenate([wq.T, wk.T, wv.T], axis=1).astype(jnp.bfloat16),
        "wo_t": wo.T.astype(jnp.bfloat16),
        "gate_t": gate.T.astype(jnp.bfloat16),
        "w1c": w1c.astype(jnp.bfloat16),    # (E, nC, D, th)
        "w3c": w3c.astype(jnp.bfloat16),    # (E, nC, D, th)
        "w2c": w2c.astype(jnp.bfloat16),    # (E, nC, th, D)
    }


if __name__ == "__main__":
    cfg = dict(dim=64, n_heads=4, n_kv_heads=2, head_dim=32, hidden_dim=128,
               num_experts=4, num_experts_per_tok=2, norm_eps=1e-5,
               rope_theta=10000.0)
    B, S = 2, 16

    key = jax.random.PRNGKey(0)
    kx, kp = jax.random.split(key)
    params = init_params(kp, cfg)
    x = jax.random.normal(kx, (B, S, cfg["dim"]), jnp.float32)

    # RoPE frequencies (prefill: positions = arange(S))
    Dh = cfg["head_dim"]
    inv_freq = 1.0 / (cfg["rope_theta"] ** (jnp.arange(0, Dh, 2, dtype=jnp.float32) / Dh))
    freqs = jnp.outer(jnp.arange(S, dtype=jnp.float32), inv_freq)        # (S, Dh/2)
    cos, sin = jnp.cos(freqs), jnp.sin(freqs)

    out = transformer_block_forward(params, x, cos, sin, cfg)
    out = jax.block_until_ready(out)
    assert out.shape == (B, S, cfg["dim"]) and bool(jnp.all(jnp.isfinite(out)))
    print("KERNEL_OK")
</pallas_src>

<mosaic_0001>
module attributes {stable_mosaic.version = 11 : i64} {
  func.func @_rmsnorm_matmul_kernel(%arg0: i32, %arg1: i32, %arg2: memref<32x64xf32, #tpu.memory_space<vmem>>, %arg3: memref<1x64xf32, #tpu.memory_space<vmem>>, %arg4: memref<64x256xbf16, #tpu.memory_space<vmem>>, %arg5: memref<32x256xbf16, #tpu.memory_space<vmem>>, %arg6: memref<32x64xbf16, #tpu.memory_space<vmem>>) attributes {dimension_semantics = [#tpu.dimension_semantics<parallel>, #tpu.dimension_semantics<arbitrary>], iteration_bounds = array<i64: 1, 1>, scalar_prefetch = 0 : i64, scratch_operands = 1 : i64, tpu.core_type = #tpu.core_type<tc>, window_params = [{transform_indices = @transform_0, window_bounds = array<i64: 32, 64>}, {pipeline_mode = #tpu.pipeline_mode<synchronous>, transform_indices = @transform_1, window_bounds = array<i64: 1, 64>}, {transform_indices = @transform_2, window_bounds = array<i64: 64, 256>}, {transform_indices = @transform_3, window_bounds = array<i64: 32, 256>}]} {
    %c0_i32 = arith.constant 0 : i32
    %0 = arith.cmpi eq, %arg1, %c0_i32 : i32
    %1 = arith.extui %0 : i1 to i32
    %c0_i32_0 = arith.constant 0 : i32
    %2 = arith.cmpi ne, %1, %c0_i32_0 : i32
    scf.if %2 {
      %c0_6 = arith.constant 0 : index
      %c0_7 = arith.constant 0 : index
      %8 = vector.load %arg2[%c0_6, %c0_7] : memref<32x64xf32, #tpu.memory_space<vmem>>, vector<32x64xf32>
      %9 = arith.mulf %8, %8 : vector<32x64xf32>
      %cst_8 = arith.constant dense<0.000000e+00> : vector<32xf32>
      %10 = vector.multi_reduction <add>, %9, %cst_8 [1] : vector<32x64xf32> to vector<32xf32>
      %11 = vector.shape_cast %10 : vector<32xf32> to vector<32x1xf32>
      %cst_9 = arith.constant 6.400000e+01 : f32
      %12 = vector.broadcast %cst_9 : f32 to vector<32x1xf32>
      %13 = arith.divf %11, %12 : vector<32x1xf32>
      %cst_10 = arith.constant 9.99999974E-6 : f32
      %14 = vector.broadcast %cst_10 : f32 to vector<32x1xf32>
      %15 = arith.addf %13, %14 : vector<32x1xf32>
      %16 = math.rsqrt %15 : vector<32x1xf32>
      %17 = vector.broadcast %16 : vector<32x1xf32> to vector<32x64xf32>
      %18 = arith.mulf %8, %17 : vector<32x64xf32>
      %c0_11 = arith.constant 0 : index
      %c0_12 = arith.constant 0 : index
      %19 = vector.load %arg3[%c0_11, %c0_12] : memref<1x64xf32, #tpu.memory_space<vmem>>, vector<1x64xf32>
      %20 = vector.broadcast %19 : vector<1x64xf32> to vector<32x64xf32>
      %21 = arith.mulf %18, %20 : vector<32x64xf32>
      %22 = arith.truncf %21 : vector<32x64xf32> to vector<32x64xbf16>
      %c0_13 = arith.constant 0 : index
      %c0_14 = arith.constant 0 : index
      %23 = vector.load %arg6[%c0_13, %c0_14] : memref<32x64xbf16, #tpu.memory_space<vmem>>, vector<32x64xbf16>
      tpu.vector_store %arg6[%c0_13, %c0_14], %22 {strides = array<i32>} : memref<32x64xbf16, #tpu.memory_space<vmem>>, vector<32x64xbf16>,
    } else {
    }
    %c0 = arith.constant 0 : index
    %c0_1 = arith.constant 0 : index
    %3 = vector.load %arg6[%c0, %c0_1] : memref<32x64xbf16, #tpu.memory_space<vmem>>, vector<32x64xbf16>
    %c0_2 = arith.constant 0 : index
    %c0_3 = arith.constant 0 : index
    %4 = vector.load %arg4[%c0_2, %c0_3] : memref<64x256xbf16, #tpu.memory_space<vmem>>, vector<64x256xbf16>
    %cst = arith.constant dense<0.000000e+00> : vector<32x256xf32>
    %5 = tpu.matmul %3, %4, %cst {dimension_numbers = #tpu.dot_dimension_numbers<[1], [0], [0], [1], [0, 0, 1, 1], [], []>} : vector<32x64xbf16>, vector<64x256xbf16>, vector<32x256xf32> -> vector<32x256xf32>
    %6 = arith.truncf %5 : vector<32x256xf32> to vector<32x256xbf16>
    %c0_4 = arith.constant 0 : index
    %c0_5 = arith.constant 0 : index
    %7 = vector.load %arg5[%c0_4, %c0_5] : memref<32x256xbf16, #tpu.memory_space<vmem>>, vector<32x256xbf16>
    tpu.vector_store %arg5[%c0_4, %c0_5], %6 {strides = array<i32>} : memref<32x256xbf16, #tpu.memory_space<vmem>>, vector<32x256xbf16>,
    return
  }
  func.func @transform_0(%arg0: i32, %arg1: i32) -> (i32, i32) {
    %c0_i32 = arith.constant 0 : i32
    %c0_i32_0 = arith.constant 0 : i32
    return %arg0, %c0_i32 : i32, i32
  }
  func.func @transform_1(%arg0: i32, %arg1: i32) -> (i32, i32) {
    %c0_i32 = arith.constant 0 : i32
    %c0_i32_0 = arith.constant 0 : i32
    %c0_i32_1 = arith.constant 0 : i32
    return %c0_i32, %c0_i32_0 : i32, i32
  }
  func.func @transform_2(%arg0: i32, %arg1: i32) -> (i32, i32) {
    %c0_i32 = arith.constant 0 : i32
    %c0_i32_0 = arith.constant 0 : i32
    return %c0_i32, %arg1 : i32, i32
  }
  func.func @transform_3(%arg0: i32, %arg1: i32) -> (i32, i32) {
    %c0_i32 = arith.constant 0 : i32
    return %arg0, %arg1 : i32, i32
  }
}

</mosaic_0001>

<bundles_post_ra>
// kernel: tpu_custom_call.1
= control target key start
LH: loop header
LB: loop body
LE: loop exit
PB: predicated region body
PF: predicated region fallthrough
CT: control target
= control target key end

     0   :  { %8 = vsyncpa [#allocation4], 0  ;;  %s559_s0 = inlined_call_operand.hbm [shape: f32[32,64], index: 0, kind: input, shape index: {}]   ;;  %s560_s1 = inlined_call_operand.hbm [shape: f32[1,64], index: 1, kind: input, shape index: {}]   ;;  %s561_s2 = inlined_call_operand.hbm [shape: bf16[64,256], index: 2, kind: input, shape index: {}]   ;;  %s562_s3 = inlined_call_operand.hbm [shape: bf16[32,256], index: 3, kind: output, shape index: {}]  }
   0x1   :  { %9 = vsyncpa [#allocation7], 0  ;;  %s29_s14 = sshll.u32 %s560_s1, 4  ;;  %s30_s14 = int_to_ptr.hbm [resolvable:$true] %s29_s14 }
   0x2   :  { %10 = vsyncpa [#allocation5], 0  ;;  %s479_s15 = smov [#allocation6]   ;;  %s15_s19 = sshll.u32 %s559_s0, 4  ;;  %s16_s19 = int_to_ptr.hbm [resolvable:$true] %s15_s19 }
   0x3   :  { %s31_s16 = sshll.u32 %s479_s15, 4  ;;  %s480_s20 = smov [#allocation3]   ;;  %s32_s16 = int_to_ptr.vmem [resolvable:$true] %s31_s16 }
   0x4   :  { %34 = dma.hbm_to_vmem [thread:$0]  %s30_s14, 16, %s32_s16, [#allocation7]  }
   0x5   :  { %s17_s21 = sshll.u32 %s480_s20, 4  ;;  %s481_s22 = smov 128   ;;  %s18_s21 = int_to_ptr.vmem [resolvable:$true] %s17_s21 }
   0x6   :  { %s482_s23 = smov 8   ;;  %s39_s25 = sshll.u32 %s561_s2, 4  ;;  %s40_s25 = int_to_ptr.hbm [resolvable:$true] %s39_s25 }
   0x7   :  { %23 = dma.hbm_to_vmem [thread:$0]  %s16_s19, 512, %s18_s21, [#allocation4], %s481_s22, %s481_s22, %s482_s23  }
   0x8   :  { %s483_s26 = smov [#allocation8]  }
   0x9   :  { %s41_s27 = sshll.u32 %s483_s26, 4  ;;  %s42_s27 = int_to_ptr.vmem [resolvable:$true] %s41_s27 }
   0xa   :  { %47 = dma.hbm_to_vmem [thread:$0]  %s40_s25, 1024, %s42_s27, [#allocation7], %s481_s22, %s481_s22, %s482_s23  }
   0xb   :  { %473 = dma.done.wait [#allocation4], 512  }
   0xc   :  { %474 = vsyncadd [#allocation4], 4294966784 }
   0xd   :  { %475 = dma.done.wait [#allocation7], 1040  }
   0xe   :  { %476 = vsyncadd [#allocation7], 4294966256  ;;  %v521_v0 = vld [vmem:[#allocation3 + $0x10] sm:$0xff]  ;;  %vm73_vm0 = vcmask 523264   ;;  %v523_v1 = vld [vmem:[#allocation3] sm:$0xff]  ;;  %v484_v12 = vmov 64.0  }
   0xf   :  { %v71_v2 = vmul.f32 %v521_v0, %v521_v0  ;;  %v69_v3 = vmul.f32 %v523_v1, %v523_v1  ;;  %v529_v4 = vld [vmem:[#allocation3 + $0x18] sm:$0xff]  ;;  %v531_v5 = vld [vmem:[#allocation3 + $0x8] sm:$0xff]  ;;  %367 = vrcp.f32 %v484_v12  ;;  %v331_v18 = vld [vmem:[#allocation8 + $0x30] sm:$0xf]  ;;  %vm157_vm8 = vcmask 519168   ;;  %s485_s0 = smov [#allocation9]  }
  0x10   :  { %v72_v8 = vmul.f32 %v529_v4, %v529_v4  ;;  %v70_v9 = vmul.f32 %v531_v5, %v531_v5  ;;  %v350_v19 = vld [vmem:[#allocation8 + $0x34] sm:$0xf0]  ;;  %v349_v20 = vld [vmem:[#allocation8 + $0x34] sm:$0xf]  ;;  %v333_v23 = vld [vmem:[#allocation8 + $0x38] sm:$0xf0] }
  0x11   :  { %v80_v6 = vsel %vm73_vm0, %v71_v2, 0.0  ;;  %v74_v7 = vsel %vm73_vm0, %v69_v3, 0.0  ;;  %v332_v22 = vor.u32 %v350_v19, %v331_v18  ;;  %v336_v24 = vor.u32 %v349_v20, %v333_v23  ;;  %v323_v29 = vld [vmem:[#allocation8 + $0x20] sm:$0xf]  ;;  %v348_v30 = vld [vmem:[#allocation8 + $0x24] sm:$0xf0] }
  0x12   :  { %81 = vadd.xlane.f32.xlu0 %v80_v6  ;;  %75 = vadd.xlane.f32.xlu1 %v74_v7  ;;  %v83_v10 = vsel %vm73_vm0, %v72_v8, 0.0  ;;  %v77_v11 = vsel %vm73_vm0, %v70_v9, 0.0  ;;  %v347_v31 = vld [vmem:[#allocation8 + $0x24] sm:$0xf]  ;;  %v324_v32 = vor.u32 %v348_v30, %v323_v29  ;;  %v325_v33 = vld [vmem:[#allocation8 + $0x28] sm:$0xf0] }
  0x13   :  { %235 = vmatpush.bf16.msra.mxu0 %v332_v22  ;;  %351 = vmatpush.bf16.msra.mxu2 %v332_v22  ;;  %v328_v36 = vor.u32 %v347_v31, %v325_v33  ;;  %v315_v37 = vld [vmem:[#allocation8 + $0x10] sm:$0xf]  ;;  %v346_v38 = vld [vmem:[#allocation8 + $0x14] sm:$0xf0]  ;;  %v345_v39 = vld [vmem:[#allocation8 + $0x14] sm:$0xf] }
  0x14   :  { %254 = vmatpush.bf16.msra.mxu1 %v336_v24  ;;  %355 = vmatpush.bf16.msra.mxu3 %v336_v24  ;;  %v316_v40 = vor.u32 %v346_v38, %v315_v37  ;;  %v317_v41 = vld [vmem:[#allocation8 + $0x18] sm:$0xf0]  ;;  %v307_v42 = vld [vmem:[#allocation8] sm:$0xf]  ;;  %v344_v43 = vld [vmem:[#allocation8 + $0x4] sm:$0xf0] }
  0x15   :  { %v368_v13 = vpop.eup %367  ;;  %v320_v44 = vor.u32 %v345_v39, %v317_v41  ;;  %v343_v45 = vld [vmem:[#allocation8 + $0x4] sm:$0xf]  ;;  %v309_v46 = vld [vmem:[#allocation8 + $0x8] sm:$0xf0]  ;;  %v308_v49 = vor.u32 %v344_v43, %v307_v42  ;;  %v366_v9 = vld [vmem:[#allocation6] ss:$0 sm:$0xff] }
  0x16   :  { %v87_v14 = vmul.f32 64.0, %v368_v13  ;;  %vm91_vm1 = vweird.f32 %v368_v13  ;;  %v312_v52 = vor.u32 %v343_v45, %v309_v46  ;;  %s281_s2 = sshll.u32 %s485_s0, 4  ;;  %s283_s30 = sshll.u32 %s562_s3, 4  ;;  %s282_s2 = int_to_ptr.vmem [resolvable:$true] %s281_s2  ;;  %s284_s30 = int_to_ptr.hbm [resolvable:$true] %s283_s30 }
  0x17   :  { %236 = vmatpush.bf16.msra.mxu0 %v324_v32  ;;  %352 = vmatpush.bf16.msra.mxu2 %v324_v32 }
  0x18   :  { %v88_v15 = vsub.f32 1.0, %v87_v14  ;;  %255 = vmatpush.bf16.msra.mxu1 %v328_v36  ;;  %356 = vmatpush.bf16.msra.mxu3 %v328_v36 }
  0x1a   :  { %84 = vadd.xlane.f32.xlu0 %v83_v10  ;;  %78 = vadd.xlane.f32.xlu1 %v77_v11  ;;  %v89_v16 = vmul.f32 %v368_v13, %v88_v15 }
  0x1b   :  { %237 = vmatpush.bf16.msra.mxu0 %v316_v40  ;;  %353 = vmatpush.bf16.msra.mxu2 %v316_v40 }
  0x1c   :  { %v90_v17 = vadd.f32 %v368_v13, %v89_v16  ;;  %256 = vmatpush.bf16.msra.mxu1 %v320_v44  ;;  %357 = vmatpush.bf16.msra.mxu3 %v320_v44 }
  0x1e   :  { %v92_v21 = vsel %vm91_vm1, %v368_v13, %v90_v17 }
  0x1f   :  { %238 = vmatpush.bf16.msra.mxu0 %v308_v49  ;;  %354 = vmatpush.bf16.msra.mxu2 %v308_v49 }
  0x20   :  { %257 = vmatpush.bf16.msra.mxu1 %v312_v52  ;;  %358 = vmatpush.bf16.msra.mxu3 %v312_v52 }
  0x85   :  { %v82_v25 = vpop.xlane.xlu0 %81  ;;  %v76_v26 = vpop.xlane.xlu1 %75 }
  0x86   :  { %v95_v27 = vmul.f32 %v92_v21, %v82_v25  ;;  %v93_v28 = vmul.f32 %v92_v21, %v76_v26 }
  0x88   :  { %v99_v34 = vadd.f32 1e-05, %v95_v27  ;;  %v97_v35 = vadd.f32 1e-05, %v93_v28 }
  0x8a   :  { %369 = vrsqrt.f32 %v99_v34  ;;  %vm107_vm3 = vweird.f32 %v97_v35  ;;  %vm127_vm5 = vweird.f32 %v99_v34 }
  0x8b   :  { %371 = vrsqrt.f32 %v97_v35 }
  0x8d   :  { %v85_v47 = vpop.xlane.xlu0 %84  ;;  %v79_v48 = vpop.xlane.xlu1 %78 }
  0x8e   :  { %v96_v50 = vmul.f32 %v92_v21, %v85_v47  ;;  %v94_v51 = vmul.f32 %v92_v21, %v79_v48 }
  0x90   :  { %v370_v53 = vpop.eup %369  ;;  %v100_v54 = vadd.f32 1e-05, %v96_v50  ;;  %v98_v55 = vadd.f32 1e-05, %v94_v51 }
  0x91   :  { %v372_v56 = vpop.eup %371  ;;  %v122_v57 = vmul.f32 %v370_v53, %v99_v34  ;;  %vm128_vm2 = vweird.f32 %v370_v53 }
  0x92   :  { %v102_v58 = vmul.f32 %v372_v56, %v97_v35  ;;  %373 = vrsqrt.f32 %v100_v54  ;;  %vm108_vm4 = vweird.f32 %v372_v56  ;;  %vm129_vm6 = vmor %vm127_vm5, %vm128_vm2  ;;  %vm117_vm10 = vweird.f32 %v98_v55 }
  0x93   :  { %v123_v59 = vmul.f32 %v370_v53, %v122_v57  ;;  %375 = vrsqrt.f32 %v98_v55  ;;  %vm109_vm7 = vmor %vm107_vm3, %vm108_vm4  ;;  %vm137_vm12 = vweird.f32 %v100_v54 }
  0x94   :  { %v103_v60 = vmul.f32 %v372_v56, %v102_v58 }
  0x95   :  { %v124_v61 = vmul.f32 0.5, %v123_v59 }
  0x96   :  { %v104_v62 = vmul.f32 0.5, %v103_v60 }
  0x97   :  { %v125_v63 = vsub.f32 1.5, %v124_v61 }
  0x98   :  { %v374_v2 = vpop.eup %373  ;;  %v105_v3 = vsub.f32 1.5, %v104_v62 }
  0x99   :  { %v376_v6 = vpop.eup %375  ;;  %v126_v7 = vmul.f32 %v370_v53, %v125_v63  ;;  %v132_v8 = vmul.f32 %v374_v2, %v100_v54  ;;  %vm138_vm9 = vweird.f32 %v374_v2 }
  0x9a   :  { %v106_v10 = vmul.f32 %v372_v56, %v105_v3  ;;  %v112_v11 = vmul.f32 %v376_v6, %v98_v55  ;;  %vm118_vm11 = vweird.f32 %v376_v6  ;;  %vm139_vm13 = vmor %vm137_vm12, %vm138_vm9 }
  0x9b   :  { %v130_v12 = vsel %vm129_vm6, %v370_v53, %v126_v7  ;;  %v133_v13 = vmul.f32 %v374_v2, %v132_v8  ;;  %vm119_vm14 = vmor %vm117_vm10, %vm118_vm11 }
  0x9c   :  { %v143_v14 = vmul.f32 %v130_v12, %v521_v0  ;;  %v110_v15 = vsel %vm109_vm7, %v372_v56, %v106_v10  ;;  %v113_v16 = vmul.f32 %v376_v6, %v112_v11 }
  0x9d   :  { %v141_v17 = vmul.f32 %v110_v15, %v523_v1  ;;  %v134_v18 = vmul.f32 0.5, %v133_v13 }
  0x9e   :  { %v151_v19 = vmul.f32 %v366_v9, %v143_v14  ;;  %v114_v20 = vmul.f32 0.5, %v113_v16 }
  0x9f   :  { %v149_v21 = vmul.f32 %v366_v9, %v141_v17  ;;  %v135_v22 = vsub.f32 1.5, %v134_v18 }
  0xa0   :  { %v155_v23 = vpack.c.bf16 %v151_v19, %v151_v19  ;;  %v115_v24 = vsub.f32 1.5, %v114_v20 }
  0xa1   :  { %v153_v25 = vpack.c.bf16 %v149_v21, %v149_v21  ;;  %v136_v26 = vmul.f32 %v374_v2, %v135_v22 }
  0xa2   :  { %160 = vst.msk [vmem:[#allocation2 + $0x8] sm:$0xf] %vm157_vm8, %v155_v23  ;;  %v116_v0 = vmul.f32 %v376_v6, %v115_v24 }
  0xa3   :  { %158 = vst.msk [vmem:[#allocation2] sm:$0xf] %vm157_vm8, %v153_v25  ;;  %v140_v1 = vsel %vm139_vm13, %v374_v2, %v136_v26 }
  0xa4   :  { %v144_v27 = vmul.f32 %v140_v1, %v529_v4  ;;  %v120_v28 = vsel %vm119_vm14, %v376_v6, %v116_v0 }
  0xa5   :  { %v142_v29 = vmul.f32 %v120_v28, %v531_v5 }
  0xa6   :  { %v152_v30 = vmul.f32 %v366_v9, %v144_v27 }
  0xa7   :  { %v150_v31 = vmul.f32 %v366_v9, %v142_v29 }
  0xa8   :  { %v156_v32 = vpack.c.bf16 %v152_v30, %v152_v30 }
  0xa9   :  { %v154_v33 = vpack.c.bf16 %v150_v31, %v150_v31 }
  0xaa   :  { %161 = vst.msk [vmem:[#allocation2 + $0xc] sm:$0xf] %vm157_vm8, %v156_v32 }
  0xab   :  { %159 = vst.msk [vmem:[#allocation2 + $0x4] sm:$0xf] %vm157_vm8, %v154_v33 }
  0xb1   :  { %v342_v34 = vld [vmem:[#allocation2 + $0x8] sm:$0xff] }
  0xb2   :  { %v341_v35 = vld [vmem:[#allocation2] sm:$0xff]  ;;  %338 = vmatmul.msk.bf16.vlgmr.msra.gmra.mxu2 %vm73_vm0, %v342_v34  ;;  %340 = vmatmul.msk.bf16.vlgmr.msra.gmra.mxu3 %vm73_vm0, %v342_v34 }
  0xb3   :  { %337 = vmatmul.msk.bf16.vlgmr.msra.gmra.mxu0 %vm73_vm0, %v341_v35  ;;  %339 = vmatmul.msk.bf16.vlgmr.msra.gmra.mxu1 %vm73_vm0, %v341_v35 }
 0x130   :  { %v240_v4 = vpop.f32.mrf.mxu0  ;;  %v259_v5 = vpop.f32.mrf.mxu1 }
 0x131   :  { %v269_v36 = vpack.c.bf16 %v259_v5, %v240_v4 }
 0x133   :  { %273 = vst [vmem:[#allocation9] sm:$0xff] %v269_v36 }
 0x135   :  { %v245_v37 = vpop.f32.mrf.mxu2  ;;  %v264_v38 = vpop.f32.mrf.mxu3 }
 0x136   :  { %v271_v39 = vpack.c.bf16 %v264_v38, %v245_v37 }
 0x138   :  { %275 = vst [vmem:[#allocation9 + $0x10] sm:$0xff] %v271_v39  ;;  %v242_v40 = vpop.f32.mrf.mxu0  ;;  %v261_v41 = vpop.f32.mrf.mxu1 }
 0x139   :  { %v270_v42 = vpack.c.bf16 %v261_v41, %v242_v40 }
 0x13b   :  { %274 = vst [vmem:[#allocation9 + $0x8] sm:$0xff] %v270_v42 }
 0x13d   :  { %v247_v43 = vpop.f32.mrf.mxu2  ;;  %v266_v44 = vpop.f32.mrf.mxu3 }
 0x13e   :  { %v272_v45 = vpack.c.bf16 %v266_v44, %v247_v43 }
 0x140   :  { %276 = vst [vmem:[#allocation9 + $0x18] sm:$0xff] %v272_v45 }
 0x141   :  { %289 = dma.vmem_to_hbm [thread:$0]  %s282_s2, 512, %s284_s30, [#allocation5], %s481_s22, %s481_s22, %s482_s23  }
 0x142   :  { %477 = dma.done.wait [#allocation5], 512  }
 0x143   :  { %478 = vsyncadd [#allocation5], 4294966784 }
 0x144   :  { %294 = vsyncpa [#allocation4], 1 }
 0x145   :  { %295 = vsyncpa [#allocation7], 1 }
 0x146   :  { %296 = vsyncpa [#allocation5], 1 }

</bundles_post_ra>
